<compile_context>
chip_gen: v5e
topology: v5e:2x2
jax: 0.10.0
libtpu: 0.0.40
codegen_flags: <defaults>
</compile_context>

<pallas_src>
import functools

import jax
import jax.numpy as jnp
import numpy as np
from jax import lax
from jax.experimental import pallas as pl
from jax.experimental.pallas import tpu as pltpu

# Full-f32 matmul numerics for both the reference and the in-kernel MXU dots;
# the bf16 fast path is selected explicitly via matmul_dtype instead.
jax.config.update("jax_default_matmul_precision", "highest")

_VMEM_LIMIT = 32 * 1024 * 1024   # safe on v7x (64 MiB/TC); plenty on v5e/v6e.


# ------------------------------ tiling helpers ------------------------------

def _pick_tile(dim, target, align):
    """Largest legal tile <= target: full extent if small, else align-multiple."""
    if dim <= target:
        return dim
    return max(align, (target // align) * align)


def _itemsize(dt):
    return jnp.dtype(dt).itemsize


# ------------------------- fused Q/K/V projection ---------------------------

def _qkv_proj_kernel(x_ref, wq_ref, wk_ref, wv_ref, bq_ref, bv_ref,
                     q_ref, k_ref, v_ref, *, matmul_dtype):
    x = x_ref[...]
    if matmul_dtype is not None:
        x = x.astype(matmul_dtype)       # weights are already stored in matmul_dtype

    def mm(w_ref):
        return jnp.dot(x, w_ref[...], preferred_element_type=jnp.float32)

    q_ref[...] = (mm(wq_ref) + bq_ref[...]).astype(q_ref.dtype)
    k_ref[...] = mm(wk_ref).astype(k_ref.dtype)          # key has no bias
    v_ref[...] = (mm(wv_ref) + bv_ref[...]).astype(v_ref.dtype)


def qkv_proj_pallas(x2d, wq_t, wk_t, wv_t, bq2d, bv2d, matmul_dtype=None):
    """Fused q/k/v projection. Weight-stationary: each weight tile read once."""
    M, K = x2d.shape
    N = wq_t.shape[1]
    tm = _pick_tile(M, 256, 8)
    tn = _pick_tile(N, 512, 128)
    nm, nn = pl.cdiv(M, tm), pl.cdiv(N, tn)

    # Grid: N outer (slow), M inner (fast). The weight/bias block index depends
    # only on the outer axis -> each weight tile is DMA'd once; activations
    # (usually much smaller than the 3 weight matrices) are re-streamed nn times.
    x_spec = pl.BlockSpec((tm, K), lambda j, i: (i, 0))
    w_spec = pl.BlockSpec((K, tn), lambda j, i: (0, j))
    b_spec = pl.BlockSpec((1, tn), lambda j, i: (0, j))
    o_spec = pl.BlockSpec((tm, tn), lambda j, i: (i, j))

    out_dtype = matmul_dtype if matmul_dtype is not None else x2d.dtype
    out_sds = jax.ShapeDtypeStruct((M, N), out_dtype)

    cost = pl.CostEstimate(
        flops=int(3 * 2 * M * K * N),
        transcendentals=0,
        bytes_accessed=int(nn * M * K * _itemsize(x2d.dtype)
                           + 3 * K * N * _itemsize(wq_t.dtype)
                           + 3 * M * N * _itemsize(out_dtype)
                           + 2 * N * 4))

    return pl.pallas_call(
        functools.partial(_qkv_proj_kernel, matmul_dtype=matmul_dtype),
        out_shape=(out_sds, out_sds, out_sds),
        grid=(nn, nm),
        in_specs=[x_spec, w_spec, w_spec, w_spec, b_spec, b_spec],
        out_specs=(o_spec, o_spec, o_spec),
        compiler_params=pltpu.CompilerParams(
            dimension_semantics=("parallel", "parallel"),
            vmem_limit_bytes=_VMEM_LIMIT),
        cost_estimate=cost,
    )(x2d, wq_t, wk_t, wv_t, bq2d, bv2d)


# ----------------------------- generic linear -------------------------------

def _linear_kernel(*refs, has_bias, matmul_dtype):
    if has_bias:
        x_ref, w_ref, b_ref, o_ref = refs
    else:
        x_ref, w_ref, o_ref = refs
        b_ref = None
    x = x_ref[...]
    if matmul_dtype is not None:
        x = x.astype(matmul_dtype)
    acc = jnp.dot(x, w_ref[...], preferred_element_type=jnp.float32)
    if has_bias:
        acc = acc + b_ref[...]
    o_ref[...] = acc.astype(o_ref.dtype)


def linear_pallas(x2d, w_t, b2d=None, matmul_dtype=None, out_dtype=None):
    """F.linear with pre-transposed weight: x2d @ w_t (+ b). Weight-stationary."""
    M, K = x2d.shape
    N = w_t.shape[1]
    tm = _pick_tile(M, 256, 8)
    tn = _pick_tile(N, 512, 128)
    nm, nn = pl.cdiv(M, tm), pl.cdiv(N, tn)

    in_specs = [pl.BlockSpec((tm, K), lambda j, i: (i, 0)),
                pl.BlockSpec((K, tn), lambda j, i: (0, j))]
    args = [x2d, w_t]
    if b2d is not None:
        in_specs.append(pl.BlockSpec((1, tn), lambda j, i: (0, j)))
        args.append(b2d)

    if out_dtype is None:
        out_dtype = matmul_dtype if matmul_dtype is not None else x2d.dtype

    cost = pl.CostEstimate(
        flops=int(2 * M * K * N), transcendentals=0,
        bytes_accessed=int(nn * M * K * _itemsize(x2d.dtype)
                           + K * N * _itemsize(w_t.dtype)
                           + M * N * _itemsize(out_dtype)))

    return pl.pallas_call(
        functools.partial(_linear_kernel, has_bias=b2d is not None,
                          matmul_dtype=matmul_dtype),
        out_shape=jax.ShapeDtypeStruct((M, N), out_dtype),
        grid=(nn, nm),
        in_specs=in_specs,
        out_specs=pl.BlockSpec((tm, tn), lambda j, i: (i, j)),
        compiler_params=pltpu.CompilerParams(
            dimension_semantics=("parallel", "parallel"),
            vmem_limit_bytes=_VMEM_LIMIT),
        cost_estimate=cost,
    )(*args)


# ------------------------------- attention ----------------------------------

def _attn_kernel(*refs, heads, head_dim, scale, has_mask, return_qk, matmul_dtype):
    # Block shapes:
    #   q_ref : (1, tq, heads*D)     k_ref/v_ref : (1, Tk, heads*D)
    #   m_ref : (tq, Tk) f32         (only when has_mask)
    #   wv_ref: (1, tq, heads*D)     qk_ref: (1, heads, tq, Tk) f32 (optional)
    #   wv_acc: (tq, heads*D) f32 VMEM scratch
    n_in = 4 if has_mask else 3
    q_ref, k_ref, v_ref = refs[0], refs[1], refs[2]
    m_ref = refs[3] if has_mask else None
    wv_ref = refs[n_in]
    qk_ref = refs[n_in + 1] if return_qk else None
    wv_acc = refs[-1]

    # Scale both q and k by D**-0.25 exactly like the reference; hoisted to one
    # VPU pass per tile instead of per-head work.
    q_all = q_ref[0] * scale
    k_all = k_ref[0] * scale
    v_all = v_ref[0]
    mask_tile = m_ref[...] if has_mask else None

    for h in range(heads):                    # static, small unroll
        c = h * head_dim
        q = q_all[:, c:c + head_dim]
        k = k_all[:, c:c + head_dim]
        v = v_all[:, c:c + head_dim]
        if matmul_dtype is not None:
            q = q.astype(matmul_dtype)
            k = k.astype(matmul_dtype)
            v = v.astype(matmul_dtype)
        # (tq, D) x (Tk, D) contracting on D (no explicit transpose materialized).
        s = lax.dot_general(q, k, (((1,), (1,)), ((), ())),
                            preferred_element_type=jnp.float32)
        if has_mask:
            s = s + mask_tile
        if return_qk:
            qk_ref[0, h] = s
        mx = jnp.max(s, axis=-1, keepdims=True)
        e = jnp.exp(s - mx)
        # Exact (tq,1) reciprocal; the approx EUP reciprocal was a numerics issue.
        p = e * (1.0 / jnp.sum(e, axis=-1, keepdims=True))
        p = p.astype(v.dtype)
        wv_acc[:, c:c + head_dim] = jnp.dot(p, v, preferred_element_type=jnp.float32)

    wv_ref[0] = wv_acc[...].astype(wv_ref.dtype)     # single lane-dense store


def attention_pallas(q, k, v, mask, n_head, matmul_dtype=None, return_qk=True):
    """q:(B,T,n_state), k/v:(B,Tk,n_state) -> (wv (B,T,n_state), qk f32 or None)."""
    B, T, n_state = q.shape
    _, Tk, _ = k.shape
    D = n_state // n_head
    scale = float(D) ** (-0.25)

    # Heads per grid step: make the head-block lane width a multiple of 128
    # (lane-dense stores) or the full n_state when n_state is small.
    hpb = n_head
    if D % 128 == 0:
        hpb = 1
    else:
        for cand in range(1, n_head):
            if n_head % cand == 0 and (cand * D) % 128 == 0:
                hpb = cand
                break
    hb_dim = hpb * D
    num_hb = n_head // hpb

    # Query tiling bounds live VMEM for long T; k/v stay resident per
    # (batch, head-block) since their block index does not depend on qi.
    tq = T if T <= 512 else 256
    if return_qk:
        # Keep the double-buffered f32 qk output block within ~8 MiB (v7x VMEM
        # is only 64 MiB per TensorCore).
        while tq > 8 and 2 * hpb * tq * Tk * 4 > 8 * 1024 * 1024:
            tq = max(8, ((tq // 2) + 7) // 8 * 8)
    num_qt = pl.cdiv(T, tq)

    has_mask = mask is not None
    kernel = functools.partial(_attn_kernel, heads=hpb, head_dim=D, scale=scale,
                               has_mask=has_mask, return_qk=return_qk,
                               matmul_dtype=matmul_dtype)

    # Single leading parallel axis of extent B*num_hb (>= 2 whenever there is
    # more than one batch or head-block) so both v7x TensorCores stay busy.
    grid = (B * num_hb, num_qt)

    def q_map(bh, qi):
        return (bh // num_hb, qi, bh % num_hb)

    def kv_map(bh, qi):
        return (bh // num_hb, 0, bh % num_hb)

    def qk_map(bh, qi):
        return (bh // num_hb, bh % num_hb, qi, 0)

    in_specs = [pl.BlockSpec((1, tq, hb_dim), q_map),
                pl.BlockSpec((1, Tk, hb_dim), kv_map),
                pl.BlockSpec((1, Tk, hb_dim), kv_map)]
    args = [q, k, v]
    if has_mask:
        in_specs.append(pl.BlockSpec((tq, Tk), lambda bh, qi: (qi, 0)))
        args.append(mask[:T, :Tk].astype(jnp.float32))

    wv_sds = jax.ShapeDtypeStruct((B, T, n_state), q.dtype)
    wv_spec = pl.BlockSpec((1, tq, hb_dim), q_map)

    flops = 4 * B * n_head * T * Tk * D                     # qk + wv matmuls
    bytes_acc = (_itemsize(q.dtype) * (q.size + k.size + v.size + B * T * n_state)
                 + (4 * B * n_head * T * Tk if return_qk else 0)
                 + (4 * T * Tk if has_mask else 0))
    cost = pl.CostEstimate(flops=int(flops),
                           transcendentals=int(B * n_head * T * Tk),
                           bytes_accessed=int(bytes_acc))

    cp = pltpu.CompilerParams(dimension_semantics=("parallel", "parallel"),
                              vmem_limit_bytes=_VMEM_LIMIT)
    scratch = [pltpu.VMEM((tq, hb_dim), jnp.float32)]

    if return_qk:
        qk_sds = jax.ShapeDtypeStruct((B, n_head, T, Tk), jnp.float32)
        qk_spec = pl.BlockSpec((1, hpb, tq, Tk), qk_map)
        wv, qk = pl.pallas_call(
            kernel, out_shape=(wv_sds, qk_sds), grid=grid,
            in_specs=in_specs, out_specs=(wv_spec, qk_spec),
            scratch_shapes=scratch, compiler_params=cp, cost_estimate=cost,
        )(*args)
        return wv, qk

    wv = pl.pallas_call(
        kernel, out_shape=wv_sds, grid=grid,
        in_specs=in_specs, out_specs=wv_spec,
        scratch_shapes=scratch, compiler_params=cp, cost_estimate=cost,
    )(*args)
    return wv, None


# --------------------------- Module-level wrapper ---------------------------

class MultiHeadAttentionPallas:
    def __init__(self, n_state: int, n_head: int, key, matmul_dtype=None):
        self.n_state = n_state
        self.n_head = n_head
        # matmul_dtype=jnp.bfloat16 is the recommended fast path on v5e/v6e/v7x
        # (v5e especially: f32 MXU input is multi-pass). Weights are then stored
        # in HBM as bf16 and q/k/v/wv intermediates are bf16; accumulation,
        # softmax and the returned qk stay f32.  Default None = exact f32 (used
        # for the reference check below).
        self.matmul_dtype = matmul_dtype

        ks = jax.random.split(key, 7)
        s = 1.0 / np.sqrt(n_state)
        self.wq = jax.random.uniform(ks[0], (n_state, n_state), jnp.float32, -s, s)
        self.bq = jax.random.uniform(ks[1], (n_state,), jnp.float32, -s, s)
        self.wk = jax.random.uniform(ks[2], (n_state, n_state), jnp.float32, -s, s)
        self.wv = jax.random.uniform(ks[3], (n_state, n_state), jnp.float32, -s, s)
        self.bv = jax.random.uniform(ks[4], (n_state,), jnp.float32, -s, s)
        self.wo = jax.random.uniform(ks[5], (n_state, n_state), jnp.float32, -s, s)
        self.bo = jax.random.uniform(ks[6], (n_state,), jnp.float32, -s, s)

        wd = matmul_dtype if matmul_dtype is not None else jnp.float32
        # Pre-transpose once (F.linear is x @ W^T) and pre-cast to the MXU input
        # dtype so the kernels never re-stream or re-cast f32 weights.
        self.wq_t = jnp.transpose(self.wq).astype(wd)
        self.wk_t = jnp.transpose(self.wk).astype(wd)
        self.wv_t = jnp.transpose(self.wv).astype(wd)
        self.wo_t = jnp.transpose(self.wo).astype(wd)
        # Biases stay f32: they are added to the f32 accumulator in-kernel.
        self.bq2d = self.bq.reshape(1, n_state)
        self.bv2d = self.bv.reshape(1, n_state)
        self.bo2d = self.bo.reshape(1, n_state)

    def __call__(self, x, xa=None, mask=None, return_qk=True):
        # TODO(synk): kv_cache path (dict keyed by nn.Module identity) has no
        # Pallas analogue; only the fresh-projection path is implemented.
        B, T, n = x.shape
        md = self.matmul_dtype

        if xa is None:
            # Fused Q/K/V projection: one launch, x read from HBM once.
            q2, k2, v2 = qkv_proj_pallas(x.reshape(B * T, n), self.wq_t,
                                         self.wk_t, self.wv_t,
                                         self.bq2d, self.bv2d, md)
            q = q2.reshape(B, T, n)
            k = k2.reshape(B, T, n)
            v = v2.reshape(B, T, n)
        else:
            Bk, Tk, _ = xa.shape
            q = linear_pallas(x.reshape(B * T, n), self.wq_t, self.bq2d, md).reshape(B, T, n)
            k = linear_pallas(xa.reshape(Bk * Tk, n), self.wk_t, None, md).reshape(Bk, Tk, n)
            v = linear_pallas(xa.reshape(Bk * Tk, n), self.wv_t, self.bv2d, md).reshape(Bk, Tk, n)

        wv, qk = attention_pallas(q, k, v, mask, self.n_head, md, return_qk=return_qk)
        out = linear_pallas(wv.reshape(B * T, n), self.wo_t, self.bo2d, md,
                            out_dtype=x.dtype).reshape(B, T, n)
        return out, qk


# ----------------------------- pure-JAX reference ----------------------------

def reference(mha, x, mask=None):
    B, T, n_state = x.shape
    H = mha.n_head
    D = n_state // H
    q = x @ mha.wq.T + mha.bq
    k = x @ mha.wk.T
    v = x @ mha.wv.T + mha.bv
    scale = float(D) ** (-0.25)
    qh = q.reshape(B, T, H, D).transpose(0, 2, 1, 3) * scale
    kh = k.reshape(B, T, H, D).transpose(0, 2, 3, 1) * scale
    vh = v.reshape(B, T, H, D).transpose(0, 2, 1, 3)
    qk = jnp.einsum('bhqd,bhdk->bhqk', qh, kh)
    if mask is not None:
        qk = qk + mask[:T, :T]
    qk = qk.astype(jnp.float32)
    w = jax.nn.softmax(qk, axis=-1).astype(q.dtype)
    wv = jnp.einsum('bhqk,bhkd->bhqd', w, vh).transpose(0, 2, 1, 3).reshape(B, T, n_state)
    return wv @ mha.wo.T + mha.bo, qk


# ------------------------------------ main -----------------------------------

if __name__ == "__main__":
    key = jax.random.PRNGKey(0)
    k_param, k_x = jax.random.split(key)

    batch, n_ctx, n_state, n_head = 2, 8, 32, 4
    x = jax.random.normal(k_x, (batch, n_ctx, n_state), dtype=jnp.float32)

    mha = MultiHeadAttentionPallas(n_state, n_head, k_param)

    # --- self-attention, no mask (encoder path: mask specialized away) ---
    out, qk = mha(x)
    out = jax.block_until_ready(out)
    qk = jax.block_until_ready(qk)
    out_ref, qk_ref = reference(mha, x)
    np.testing.assert_allclose(np.asarray(qk), np.asarray(qk_ref), rtol=1e-4, atol=1e-4)
    np.testing.assert_allclose(np.asarray(out), np.asarray(out_ref), rtol=1e-3, atol=1e-3)

    # --- self-attention with causal mask (decoder path) ---
    mask = jnp.triu(jnp.full((n_ctx, n_ctx), -jnp.inf, dtype=jnp.float32), k=1)
    out_m, qk_m = mha(x, mask=mask)
    out_m = jax.block_until_ready(out_m)
    qk_m = jax.block_until_ready(qk_m)
    out_ref_m, qk_ref_m = reference(mha, x, mask=mask)
    np.testing.assert_allclose(np.asarray(qk_m), np.asarray(qk_ref_m), rtol=1e-4, atol=1e-4)
    np.testing.assert_allclose(np.asarray(out_m), np.asarray(out_ref_m), rtol=1e-3, atol=1e-3)

    print("KERNEL_OK")
</pallas_src>

<mosaic_0001>
module attributes {stable_mosaic.version = 11 : i64} {
  func.func @_qkv_proj_kernel(%arg0: i32, %arg1: i32, %arg2: memref<16x32xf32, #tpu.memory_space<vmem>>, %arg3: memref<32x32xf32, #tpu.memory_space<vmem>>, %arg4: memref<32x32xf32, #tpu.memory_space<vmem>>, %arg5: memref<32x32xf32, #tpu.memory_space<vmem>>, %arg6: memref<1x32xf32, #tpu.memory_space<vmem>>, %arg7: memref<1x32xf32, #tpu.memory_space<vmem>>, %arg8: memref<16x32xf32, #tpu.memory_space<vmem>>, %arg9: memref<16x32xf32, #tpu.memory_space<vmem>>, %arg10: memref<16x32xf32, #tpu.memory_space<vmem>>) attributes {dimension_semantics = [#tpu.dimension_semantics<parallel>, #tpu.dimension_semantics<parallel>], iteration_bounds = array<i64: 1, 1>, scalar_prefetch = 0 : i64, scratch_operands = 0 : i64, tpu.core_type = #tpu.core_type<tc>, window_params = [{transform_indices = @transform_0, window_bounds = array<i64: 16, 32>}, {transform_indices = @transform_1, window_bounds = array<i64: 32, 32>}, {transform_indices = @transform_2, window_bounds = array<i64: 32, 32>}, {transform_indices = @transform_3, window_bounds = array<i64: 32, 32>}, {transform_indices = @transform_4, window_bounds = array<i64: 1, 32>}, {transform_indices = @transform_5, window_bounds = array<i64: 1, 32>}, {transform_indices = @transform_6, window_bounds = array<i64: 16, 32>}, {transform_indices = @transform_7, window_bounds = array<i64: 16, 32>}, {transform_indices = @transform_8, window_bounds = array<i64: 16, 32>}]} {
    %c0 = arith.constant 0 : index
    %c0_0 = arith.constant 0 : index
    %0 = vector.load %arg2[%c0, %c0_0] : memref<16x32xf32, #tpu.memory_space<vmem>>, vector<16x32xf32>
    %c0_1 = arith.constant 0 : index
    %c0_2 = arith.constant 0 : index
    %1 = vector.load %arg3[%c0_1, %c0_2] : memref<32x32xf32, #tpu.memory_space<vmem>>, vector<32x32xf32>
    %cst = arith.constant dense<0.000000e+00> : vector<16x32xf32>
    %2 = tpu.matmul %0, %1, %cst {dimension_numbers = #tpu.dot_dimension_numbers<[1], [0], [0], [1], [0, 0, 1, 1], [], []>, precision = #tpu.contract_precision<fp32>} : vector<16x32xf32>, vector<32x32xf32>, vector<16x32xf32> -> vector<16x32xf32>
    %c0_3 = arith.constant 0 : index
    %c0_4 = arith.constant 0 : index
    %3 = vector.load %arg6[%c0_3, %c0_4] : memref<1x32xf32, #tpu.memory_space<vmem>>, vector<1x32xf32>
    %4 = vector.broadcast %3 : vector<1x32xf32> to vector<16x32xf32>
    %5 = arith.addf %2, %4 : vector<16x32xf32>
    %c0_5 = arith.constant 0 : index
    %c0_6 = arith.constant 0 : index
    %6 = vector.load %arg8[%c0_5, %c0_6] : memref<16x32xf32, #tpu.memory_space<vmem>>, vector<16x32xf32>
    tpu.vector_store %arg8[%c0_5, %c0_6], %5 {strides = array<i32>} : memref<16x32xf32, #tpu.memory_space<vmem>>, vector<16x32xf32>,
    %c0_7 = arith.constant 0 : index
    %c0_8 = arith.constant 0 : index
    %7 = vector.load %arg4[%c0_7, %c0_8] : memref<32x32xf32, #tpu.memory_space<vmem>>, vector<32x32xf32>
    %cst_9 = arith.constant dense<0.000000e+00> : vector<16x32xf32>
    %8 = tpu.matmul %0, %7, %cst_9 {dimension_numbers = #tpu.dot_dimension_numbers<[1], [0], [0], [1], [0, 0, 1, 1], [], []>, precision = #tpu.contract_precision<fp32>} : vector<16x32xf32>, vector<32x32xf32>, vector<16x32xf32> -> vector<16x32xf32>
    %c0_10 = arith.constant 0 : index
    %c0_11 = arith.constant 0 : index
    %9 = vector.load %arg9[%c0_10, %c0_11] : memref<16x32xf32, #tpu.memory_space<vmem>>, vector<16x32xf32>
    tpu.vector_store %arg9[%c0_10, %c0_11], %8 {strides = array<i32>} : memref<16x32xf32, #tpu.memory_space<vmem>>, vector<16x32xf32>,
    %c0_12 = arith.constant 0 : index
    %c0_13 = arith.constant 0 : index
    %10 = vector.load %arg5[%c0_12, %c0_13] : memref<32x32xf32, #tpu.memory_space<vmem>>, vector<32x32xf32>
    %cst_14 = arith.constant dense<0.000000e+00> : vector<16x32xf32>
    %11 = tpu.matmul %0, %10, %cst_14 {dimension_numbers = #tpu.dot_dimension_numbers<[1], [0], [0], [1], [0, 0, 1, 1], [], []>, precision = #tpu.contract_precision<fp32>} : vector<16x32xf32>, vector<32x32xf32>, vector<16x32xf32> -> vector<16x32xf32>
    %c0_15 = arith.constant 0 : index
    %c0_16 = arith.constant 0 : index
    %12 = vector.load %arg7[%c0_15, %c0_16] : memref<1x32xf32, #tpu.memory_space<vmem>>, vector<1x32xf32>
    %13 = vector.broadcast %12 : vector<1x32xf32> to vector<16x32xf32>
    %14 = arith.addf %11, %13 : vector<16x32xf32>
    %c0_17 = arith.constant 0 : index
    %c0_18 = arith.constant 0 : index
    %15 = vector.load %arg10[%c0_17, %c0_18] : memref<16x32xf32, #tpu.memory_space<vmem>>, vector<16x32xf32>
    tpu.vector_store %arg10[%c0_17, %c0_18], %14 {strides = array<i32>} : memref<16x32xf32, #tpu.memory_space<vmem>>, vector<16x32xf32>,
    return
  }
  func.func @transform_0(%arg0: i32, %arg1: i32) -> (i32, i32) {
    %c0_i32 = arith.constant 0 : i32
    %c0_i32_0 = arith.constant 0 : i32
    return %arg1, %c0_i32 : i32, i32
  }
  func.func @transform_1(%arg0: i32, %arg1: i32) -> (i32, i32) {
    %c0_i32 = arith.constant 0 : i32
    %c0_i32_0 = arith.constant 0 : i32
    return %c0_i32, %arg0 : i32, i32
  }
  func.func @transform_2(%arg0: i32, %arg1: i32) -> (i32, i32) {
    %c0_i32 = arith.constant 0 : i32
    %c0_i32_0 = arith.constant 0 : i32
    return %c0_i32, %arg0 : i32, i32
  }
  func.func @transform_3(%arg0: i32, %arg1: i32) -> (i32, i32) {
    %c0_i32 = arith.constant 0 : i32
    %c0_i32_0 = arith.constant 0 : i32
    return %c0_i32, %arg0 : i32, i32
  }
  func.func @transform_4(%arg0: i32, %arg1: i32) -> (i32, i32) {
    %c0_i32 = arith.constant 0 : i32
    %c0_i32_0 = arith.constant 0 : i32
    return %c0_i32, %arg0 : i32, i32
  }
  func.func @transform_5(%arg0: i32, %arg1: i32) -> (i32, i32) {
    %c0_i32 = arith.constant 0 : i32
    %c0_i32_0 = arith.constant 0 : i32
    return %c0_i32, %arg0 : i32, i32
  }
  func.func @transform_6(%arg0: i32, %arg1: i32) -> (i32, i32) {
    %c0_i32 = arith.constant 0 : i32
    return %arg1, %arg0 : i32, i32
  }
  func.func @transform_7(%arg0: i32, %arg1: i32) -> (i32, i32) {
    %c0_i32 = arith.constant 0 : i32
    return %arg1, %arg0 : i32, i32
  }
  func.func @transform_8(%arg0: i32, %arg1: i32) -> (i32, i32) {
    %c0_i32 = arith.constant 0 : i32
    return %arg1, %arg0 : i32, i32
  }
}

</mosaic_0001>

<bundles_post_ra>
// kernel: tpu_custom_call.1
= control target key start
LH: loop header
LB: loop body
LE: loop exit
PB: predicated region body
PF: predicated region fallthrough
CT: control target
= control target key end

     0   :  { %14 = vsyncpa [#allocation3], 0  ;;  %s1325_s0 = inlined_call_operand.hbm [shape: f32[16,32], index: 0, kind: input, shape index: {}]   ;;  %s1326_s1 = inlined_call_operand.hbm [shape: f32[32,32], index: 1, kind: input, shape index: {}]   ;;  %s1327_s2 = inlined_call_operand.hbm [shape: f32[32,32], index: 2, kind: input, shape index: {}]   ;;  %s1328_s3 = inlined_call_operand.hbm [shape: f32[32,32], index: 3, kind: input, shape index: {}]   ;;  %s1329_s4 = inlined_call_operand.vmem [shape: f32[1,32], index: 4, kind: input, shape index: {}]   ;;  %s1330_s5 = inlined_call_operand.vmem [shape: f32[1,32], index: 5, kind: input, shape index: {}]   ;;  %s1331_s6 = inlined_call_operand.hbm [shape: f32[16,32], index: 6, kind: output, shape index: {0}]   ;;  %s1332_s7 = inlined_call_operand.hbm [shape: f32[16,32], index: 7, kind: output, shape index: {1}]   ;;  %s1333_s8 = inlined_call_operand.hbm [shape: f32[16,32], index: 8, kind: output, shape index: {2}]  }
   0x1   :  { %15 = vsyncpa [#allocation6], 0 }
   0x2   :  { %16 = vsyncpa [#allocation9], 0 }
   0x3   :  { %17 = vsyncpa [#allocation4], 0 }
   0x4   :  { %18 = vsyncpa [#allocation12], 0  ;;  %s36_s29 = sshll.u32 %s1326_s1, 4  ;;  %s1027_s30 = smov [#allocation5]   ;;  %s37_s29 = int_to_ptr.hbm [resolvable:$true] %s36_s29 }
   0x5   :  { %s38_s9 = sshll.u32 %s1027_s30, 4  ;;  %s23_s12 = sshll.u32 %s1325_s0, 4  ;;  %s39_s9 = int_to_ptr.vmem [resolvable:$true] %s38_s9  ;;  %s24_s12 = int_to_ptr.hbm [resolvable:$true] %s23_s12 }
   0x6   :  { %s1028_s13 = smov 128   ;;  %s1029_s14 = smov 8  }
   0x7   :  { %44 = dma.hbm_to_vmem [thread:$0]  %s37_s29, 512, %s39_s9, [#allocation6], %s1028_s13, %s1028_s13, %s1029_s14  }
   0x8   :  { %s1030_s15 = smov [#allocation2]   ;;  %s49_s1 = sshll.u32 %s1327_s2, 4  ;;  %s50_s1 = int_to_ptr.hbm [resolvable:$true] %s49_s1 }
   0x9   :  { %s25_s16 = sshll.u32 %s1030_s15, 4  ;;  %s62_s20 = sshll.u32 %s1328_s3, 4  ;;  %s26_s16 = int_to_ptr.vmem [resolvable:$true] %s25_s16  ;;  %s63_s20 = int_to_ptr.hbm [resolvable:$true] %s62_s20 }
   0xa   :  { %31 = dma.hbm_to_vmem [thread:$0]  %s24_s12, 256, %s26_s16, [#allocation3], %s1028_s13, %s1028_s13, %s1029_s14  }
   0xb   :  { %s1031_s21 = smov [#allocation7]   ;;  %s1032_s23 = smov [#allocation8]  }
   0xc   :  { %s51_s22 = sshll.u32 %s1031_s21, 4  ;;  %s64_s2 = sshll.u32 %s1032_s23, 4  ;;  %s52_s22 = int_to_ptr.vmem [resolvable:$true] %s51_s22  ;;  %s65_s2 = int_to_ptr.vmem [resolvable:$true] %s64_s2 }
   0xd   :  { %57 = dma.hbm_to_vmem [thread:$0]  %s50_s1, 512, %s52_s22, [#allocation6], %s1028_s13, %s1028_s13, %s1029_s14  }
   0xe   :  { %70 = dma.hbm_to_vmem [thread:$0]  %s63_s20, 512, %s65_s2, [#allocation9], %s1028_s13, %s1028_s13, %s1029_s14  }
   0xf   :  { %1017 = dma.done.wait [#allocation3], 256  }
  0x10   :  { %1018 = vsyncadd [#allocation3], 4294967040 }
  0x11   :  { %1019 = dma.done.wait [#allocation6], 1024  }
  0x12   :  { %1020 = vsyncadd [#allocation6], 4294966272 }
  0x13   :  { %1021 = dma.done.wait [#allocation9], 512  }
  0x14   :  { %1022 = vsyncadd [#allocation9], 4294966784  ;;  %vm101_vm0 = vcmask 261120   ;;  %v96_v0 = vld [vmem:[#allocation5 + $0x18] sm:$0xff]  ;;  %v95_v1 = vld [vmem:[#allocation5 + $0x10] sm:$0xff]  ;;  %s780_s28 = sshll.u32 %s1331_s6, 4  ;;  %s781_s28 = int_to_ptr.hbm [resolvable:$true] %s780_s28 }
  0x15   :  { %v94_v2 = vld [vmem:[#allocation5 + $0x8] sm:$0xff]  ;;  %v1105_v3 = vand.u32 4294901760, %v96_v0  ;;  %v1107_v4 = vand.u32 4294901760, %v95_v1  ;;  %v93_v6 = vld [vmem:[#allocation5] sm:$0xff]  ;;  %v92_v7 = vld [vmem:[#allocation2 + $0x8] sm:$0xff]  ;;  %s1034_s30 = smov [#allocation11]  }
  0x16   :  { %v1109_v5 = vand.u32 4294901760, %v94_v2  ;;  %v91_v8 = vld [vmem:[#allocation2] sm:$0xff]  ;;  %v1111_v9 = vand.u32 4294901760, %v93_v6  ;;  %v106_v10 = vsel %vm101_vm0, %v92_v7, 0  ;;  %v329_v16 = vld [vmem:[#allocation7 + $0x18] sm:$0xff]  ;;  %v327_v33 = vld [vmem:[#allocation7 + $0x8] sm:$0xff] }
  0x17   :  { %v103_v11 = vsel %vm101_vm0, %v91_v8, 0  ;;  %830 = vmatpush.msra.mxu2 %v1105_v3  ;;  %v158_v12 = vsub.f32 %v96_v0, %v1105_v3  ;;  %v1117_v13 = vand.u32 4294901760, %v106_v10  ;;  %v164_v14 = vsub.f32 %v95_v1, %v1107_v4  ;;  %121 = vmatpush.msra.mxu0 %v1105_v3  ;;  %v328_v23 = vld [vmem:[#allocation7 + $0x10] sm:$0xff]  ;;  %v326_v39 = vld [vmem:[#allocation7] sm:$0xff]  ;;  %v551_v52 = vld [vmem:[#allocation8 + $0x18] sm:$0xff]  ;;  %s791_s9 = sshll.u32 %s1034_s30, 4  ;;  %s792_s9 = int_to_ptr.vmem [resolvable:$true] %s791_s9 }
  0x18   :  { %v1121_v15 = vsub.f32 %v94_v2, %v1109_v5  ;;  %v1125_v17 = vsub.f32 %v93_v6, %v1111_v9  ;;  %v1127_v18 = vand.u32 4294901760, %v103_v11  ;;  %v1139_v26 = vand.u32 4294901760, %v329_v16  ;;  %v550_v58 = vld [vmem:[#allocation8 + $0x10] sm:$0xff]  ;;  %v549_v62 = vld [vmem:[#allocation8 + $0x8] sm:$0xff]  ;;  %v548_v2 = vld [vmem:[#allocation8] sm:$0xff]  ;;  %s793_s12 = sshll.u32 %s1332_s7, 4  ;;  %s794_s12 = int_to_ptr.hbm [resolvable:$true] %s793_s12 }
  0x19   :  { %831 = vmatpush.msra.mxu2 %v1107_v4  ;;  %v159_v19 = vand.u32 4294901760, %v158_v12  ;;  %v1131_v20 = vsub.f32 %v106_v10, %v1117_v13  ;;  %v165_v21 = vand.u32 4294901760, %v164_v14  ;;  %123 = vmatpush.msra.mxu0 %v1107_v4  ;;  %v1152_v32 = vand.u32 4294901760, %v328_v23  ;;  %s806_s17 = sshll.u32 %s1333_s8, 4  ;;  %s807_s17 = int_to_ptr.hbm [resolvable:$true] %s806_s17 }
  0x1a   :  { %v171_v22 = vand.u32 4294901760, %v1121_v15  ;;  %v177_v24 = vand.u32 4294901760, %v1125_v17  ;;  %v1137_v25 = vsub.f32 %v103_v11, %v1127_v18  ;;  %v1166_v42 = vsub.f32 %v329_v16, %v1139_v26 }
  0x1b   :  { %832 = vmatpush.msra.mxu2 %v1109_v5  ;;  %v160_v27 = vsub.f32 %v158_v12, %v159_v19  ;;  %v1143_v28 = vand.u32 4294901760, %v1131_v20  ;;  %v166_v29 = vsub.f32 %v164_v14, %v165_v21  ;;  %125 = vmatpush.msra.mxu0 %v1109_v5  ;;  %v1168_v43 = vand.u32 4294901760, %v327_v33 }
  0x1c   :  { %v172_v30 = vsub.f32 %v1121_v15, %v171_v22  ;;  %v1150_v31 = vand.u32 4294901760, %v1137_v25  ;;  %v178_v37 = vsub.f32 %v1125_v17, %v177_v24  ;;  %v1174_v46 = vsub.f32 %v328_v23, %v1152_v32 }
  0x1d   :  { %833 = vmatpush.msra.mxu2 %v1111_v9  ;;  %v161_v34 = vand.u32 4294901760, %v160_v27  ;;  %v139_v35 = vsub.f32 %v1131_v20, %v1143_v28  ;;  %v167_v36 = vand.u32 4294901760, %v166_v29  ;;  %127 = vmatpush.msra.mxu0 %v1111_v9  ;;  %v1176_v47 = vand.u32 4294901760, %v326_v39  ;;  %v847_v27 = vld [vmem:[%s1329_s4] ss:$0 sm:$0xff]  ;;  %s1033_s4 = smov [#allocation10]  }
  0x1e   :  { %v131_v38 = vsub.f32 %v1137_v25, %v1150_v31  ;;  %v173_v41 = vand.u32 4294901760, %v172_v30  ;;  %v179_v45 = vand.u32 4294901760, %v178_v37  ;;  %v381_v48 = vand.u32 4294901760, %v1166_v42  ;;  %s778_s25 = sshll.u32 %s1033_s4, 4  ;;  %s779_s25 = int_to_ptr.vmem [resolvable:$true] %s778_s25 }
  0x1f   :  { %204 = vmatpush.msrb.mxu2 %v158_v12  ;;  %273 = vmatpush.msrb.mxu0 %v159_v19  ;;  %v1163_v40 = vand.u32 4294901760, %v139_v35  ;;  %v1182_v49 = vsub.f32 %v327_v33, %v1168_v43  ;;  %v387_v50 = vand.u32 4294901760, %v1174_v46  ;;  %v1188_v51 = vsub.f32 %v326_v39, %v1176_v47 }
  0x20   :  { %834 = vmatpush.msra.mxu3 %v161_v34  ;;  %162 = vmatpush.msra.mxu1 %v161_v34  ;;  %v1170_v44 = vand.u32 4294901760, %v131_v38  ;;  %v382_v53 = vsub.f32 %v1166_v42, %v381_v48  ;;  %v1197_v55 = vand.u32 4294901760, %v551_v52  ;;  %v1211_v61 = vand.u32 4294901760, %v550_v58 }
  0x21   :  { %207 = vmatpush.msrb.mxu2 %v164_v14  ;;  %277 = vmatpush.msrb.mxu0 %v165_v21  ;;  %v393_v54 = vand.u32 4294901760, %v1182_v49  ;;  %v388_v56 = vsub.f32 %v1174_v46, %v387_v50  ;;  %v399_v57 = vand.u32 4294901760, %v1188_v51  ;;  %v1233_v7 = vand.u32 4294901760, %v548_v2 }
  0x22   :  { %141 = vmatmul.f32.vlgmr.msra.gmra.mxu2 %v1163_v40  ;;  %835 = vmatpush.msra.mxu3 %v167_v36  ;;  %v383_v59 = vand.u32 4294901760, %v382_v53  ;;  %v1217_v63 = vsub.f32 %v551_v52, %v1197_v55 }
  0x23   :  { %210 = vmatpush.msrb.mxu2 %v1121_v15  ;;  %168 = vmatpush.msra.mxu1 %v167_v36  ;;  %v394_v60 = vsub.f32 %v1182_v49, %v393_v54  ;;  %v389_v0 = vand.u32 4294901760, %v388_v56  ;;  %v400_v1 = vsub.f32 %v1188_v51, %v399_v57  ;;  %v624_v12 = vsub.f32 %v548_v2, %v1233_v7 }
  0x24   :  { %836 = vmatpush.msra.mxu3 %v173_v41  ;;  %133 = vmatmul.f32.vlgmr.msra.gmra.mxu0 %v1170_v44  ;;  %v607_v6 = vand.u32 4294901760, %v1217_v63 }
  0x25   :  { %213 = vmatpush.msrb.mxu2 %v1125_v17  ;;  %174 = vmatpush.msra.mxu1 %v173_v41  ;;  %v401_v8 = vand.u32 4294901760, %v400_v1  ;;  %v625_v17 = vand.u32 4294901760, %v624_v12 }
  0x26   :  { %837 = vmatpush.msra.mxu3 %v179_v45  ;;  %281 = vmatpush.msrb.mxu0 %v171_v22  ;;  %v608_v11 = vsub.f32 %v1217_v63, %v607_v6 }
  0x27   :  { %343 = vmatpush.msra.mxu2 %v1139_v26  ;;  %186 = vmatmul.f32.vlgmr.msra.gmra.mxu3 %v1117_v13  ;;  %v626_v22 = vsub.f32 %v624_v12, %v625_v17 }
  0x28   :  { %180 = vmatpush.msra.mxu1 %v179_v45  ;;  %238 = vmatpush.msrb.mxu3 %v1105_v3  ;;  %v609_v16 = vand.u32 4294901760, %v608_v11 }
  0x29   :  { %182 = vmatmul.f32.vlgmr.msra.gmra.mxu1 %v1127_v18  ;;  %345 = vmatpush.msra.mxu2 %v1152_v32 }
  0x2a   :  { %308 = vmatpush.msrb.mxu1 %v1105_v3  ;;  %216 = vmatmul.f32.vlgmr.msrb.gmra.mxu2 %v1137_v25  ;;  %v1224_v3 = vand.u32 4294901760, %v549_v62 }
  0x2b   :  { %240 = vmatpush.msrb.mxu3 %v1107_v4  ;;  %347 = vmatpush.msra.mxu2 %v1168_v43 }
  0x2c   :  { %310 = vmatpush.msrb.mxu1 %v1107_v4  ;;  %285 = vmatpush.msrb.mxu0 %v177_v24  ;;  %v395_v4 = vand.u32 4294901760, %v394_v60  ;;  %v627_v24 = vand.u32 4294901760, %v626_v22 }
  0x2d   :  { %242 = vmatpush.msrb.mxu3 %v1109_v5  ;;  %287 = vmatmul.f32.vlgmr.msrb.gmra.mxu0 %v1127_v18 }
  0x2e   :  { %312 = vmatpush.msrb.mxu1 %v1109_v5  ;;  %426 = vmatpush.msra.mxu0 %v1166_v42  ;;  %v1228_v5 = vsub.f32 %v550_v58, %v1211_v61 }
  0x2f   :  { %244 = vmatpush.msrb.mxu3 %v1111_v9  ;;  %349 = vmatpush.msra.mxu2 %v1176_v47 }
  0x30   :  { %248 = vmatmul.f32.vlgmr.msrb.gmra.mxu3 %v1150_v31  ;;  %314 = vmatpush.msrb.mxu1 %v1111_v9  ;;  %v618_v9 = vsub.f32 %v549_v62, %v1224_v3  ;;  %v613_v10 = vand.u32 4294901760, %v1228_v5 }
  0x31   :  { %384 = vmatpush.msra.mxu3 %v383_v59  ;;  %316 = vmatmul.f32.vlgmr.msrb.gmra.mxu1 %v1127_v18 }
  0x32   :  { %221 = vmatmul.f32.gmra.mxu2 %v1131_v20  ;;  %460 = vmatpush.msra.mxu1 %v1139_v26  ;;  %v619_v14 = vand.u32 4294901760, %v618_v9  ;;  %v614_v15 = vsub.f32 %v1228_v5, %v613_v10 }
  0x33   :  { %390 = vmatpush.msra.mxu3 %v389_v0  ;;  %429 = vmatpush.msra.mxu0 %v1174_v46 }
  0x34   :  { %495 = vmatpush.msrb.mxu2 %v381_v48  ;;  %462 = vmatpush.msra.mxu1 %v1152_v32  ;;  %v620_v19 = vsub.f32 %v618_v9, %v619_v14  ;;  %v615_v21 = vand.u32 4294901760, %v614_v15 }
  0x35   :  { %396 = vmatpush.msra.mxu3 %v395_v4  ;;  %432 = vmatpush.msra.mxu0 %v1182_v49 }
  0x36   :  { %291 = vmatmul.f32.gmra.mxu0 %v1117_v13  ;;  %464 = vmatpush.msra.mxu1 %v1168_v43  ;;  %v621_v23 = vand.u32 4294901760, %v620_v19 }
  0x37   :  { %402 = vmatpush.msra.mxu3 %v401_v8  ;;  %499 = vmatpush.msrb.mxu2 %v387_v50 }
  0x38   :  { %254 = vmatmul.f32.gmra.mxu3 %v1143_v28  ;;  %435 = vmatpush.msra.mxu0 %v1188_v51 }
  0x39   :  { %530 = vmatpush.msrb.mxu3 %v1139_v26  ;;  %320 = vmatmul.f32.gmra.mxu1 %v1117_v13 }
  0x3a   :  { %355 = vmatmul.f32.vlgmr.msra.gmra.mxu2 %v1170_v44  ;;  %466 = vmatpush.msra.mxu1 %v1176_v47 }
  0x3b   :  { %532 = vmatpush.msrb.mxu3 %v1152_v32  ;;  %503 = vmatpush.msrb.mxu2 %v393_v54 }
  0x3c   :  { %569 = vmatpush.msrb.mxu0 %v1197_v55  ;;  %610 = vmatpush.msrb.mxu1 %v609_v16 }
  0x3d   :  { %534 = vmatpush.msrb.mxu3 %v1168_v43  ;;  %507 = vmatpush.msrb.mxu2 %v399_v57 }
  0x3e   :  { %438 = vmatmul.f32.vlgmr.msra.gmra.mxu0 %v1137_v25  ;;  %616 = vmatpush.msrb.mxu1 %v615_v21 }
  0x3f   :  { %536 = vmatpush.msrb.mxu3 %v1176_v47  ;;  %571 = vmatpush.msrb.mxu0 %v1211_v61 }
  0x40   :  { %404 = vmatmul.f32.vlgmr.msra.gmra.mxu3 %v1127_v18  ;;  %652 = vmatpush.msra.mxu2 %v1217_v63 }
  0x41   :  { %470 = vmatmul.f32.vlgmr.msra.gmra.mxu1 %v1150_v31  ;;  %573 = vmatpush.msrb.mxu0 %v1224_v3 }
  0x42   :  { %363 = vmatmul.f32.gmra.mxu2 %v1163_v40  ;;  %686 = vmatpush.msra.mxu3 %v1197_v55 }
  0x43   :  { %622 = vmatpush.msrb.mxu1 %v621_v23  ;;  %655 = vmatpush.msra.mxu2 %v1228_v5  ;;  %v848_v5 = vld [vmem:[%s1330_s5] ss:$0 sm:$0xff]  ;;  %s1035_s5 = smov [#allocation13]  }
  0x44   :  { %575 = vmatpush.msrb.mxu0 %v1233_v7  ;;  %688 = vmatpush.msra.mxu3 %v1211_v61  ;;  %s804_s7 = sshll.u32 %s1035_s5, 4  ;;  %s805_s7 = int_to_ptr.vmem [resolvable:$true] %s804_s7 }
  0x45   :  { %628 = vmatpush.msrb.mxu1 %v627_v24  ;;  %658 = vmatpush.msra.mxu2 %v618_v9 }
  0x46   :  { %443 = vmatmul.f32.gmra.mxu0 %v1131_v20  ;;  %690 = vmatpush.msra.mxu3 %v1224_v3 }
  0x47   :  { %721 = vmatpush.msra.mxu0 %v607_v6  ;;  %661 = vmatpush.msra.mxu2 %v624_v12 }
  0x48   :  { %408 = vmatmul.f32.gmra.mxu3 %v1117_v13  ;;  %756 = vmatpush.msra.mxu1 %v1197_v55 }
  0x49   :  { %476 = vmatmul.f32.gmra.mxu1 %v1143_v28  ;;  %692 = vmatpush.msra.mxu3 %v1233_v7 }
  0x4a   :  { %509 = vmatmul.f32.vlgmr.msrb.gmra.mxu2 %v1127_v18  ;;  %725 = vmatpush.msra.mxu0 %v613_v10 }
  0x4b   :  { %758 = vmatpush.msra.mxu1 %v1211_v61 }
  0x4c   :  { %729 = vmatpush.msra.mxu0 %v619_v14 }
  0x4d   :  { %760 = vmatpush.msra.mxu1 %v1224_v3 }
  0x4e   :  { %581 = vmatmul.f32.vlgmr.msrb.gmra.mxu0 %v1170_v44 }
  0x4f   :  { %733 = vmatpush.msra.mxu0 %v625_v17  ;;  %762 = vmatpush.msra.mxu1 %v1233_v7 }
  0x50   :  { %538 = vmatmul.f32.vlgmr.msrb.gmra.mxu3 %v1127_v18 }
  0x51   :  { %630 = vmatmul.f32.vlgmr.msrb.gmra.mxu1 %v1127_v18 }
  0x52   :  { %513 = vmatmul.f32.gmra.mxu2 %v1117_v13 }
  0x56   :  { %589 = vmatmul.f32.gmra.mxu0 %v1163_v40 }
  0x58   :  { %542 = vmatmul.f32.gmra.mxu3 %v1117_v13 }
  0x59   :  { %634 = vmatmul.f32.gmra.mxu1 %v1117_v13 }
  0x5a   :  { %664 = vmatmul.f32.vlgmr.msra.gmra.mxu2 %v1137_v25 }
  0x5e   :  { %735 = vmatmul.f32.vlgmr.msra.gmra.mxu0 %v1127_v18 }
  0x60   :  { %696 = vmatmul.f32.vlgmr.msra.gmra.mxu3 %v1150_v31 }
  0x61   :  { %764 = vmatmul.f32.vlgmr.msra.gmra.mxu1 %v1127_v18 }
  0x62   :  { %669 = vmatmul.f32.gmra.mxu2 %v1131_v20 }
  0x66   :  { %739 = vmatmul.f32.gmra.mxu0 %v1117_v13 }
  0x68   :  { %702 = vmatmul.f32.gmra.mxu3 %v1143_v28 }
  0x69   :  { %768 = vmatmul.f32.gmra.mxu1 %v1117_v13 }
  0xa1   :  { %v134_v26 = vpop.f32.mrf.mxu0 }
  0xa2   :  { %v135_v30 = vadd.f32 %v847_v27, %v134_v26 }
  0xa5   :  { %v142_v25 = vpop.f32.mrf.mxu2 }
  0xa6   :  { %v183_v29 = vpop.f32.mrf.mxu1  ;;  %v143_v36 = vadd.f32 %v847_v27, %v142_v25 }
  0xa7   :  { %v184_v31 = vadd.f32 %v183_v29, %v135_v30 }
  0xaa   :  { %v187_v32 = vpop.f32.mrf.mxu3  ;;  %v288_v33 = vpop.f32.mrf.mxu0 }
  0xab   :  { %v188_v40 = vadd.f32 %v187_v32, %v143_v36 }
  0xad   :  { %v217_v18 = vpop.f32.mrf.mxu2 }
  0xae   :  { %v317_v34 = vpop.f32.mrf.mxu1  ;;  %v218_v20 = vadd.f32 %v217_v18, %v184_v31 }
  0xb3   :  { %v249_v35 = vpop.f32.mrf.mxu3  ;;  %v292_v28 = vpop.f32.mrf.mxu0 }
  0xb4   :  { %v250_v37 = vadd.f32 %v249_v35, %v218_v20 }
  0xb5   :  { %v222_v38 = vpop.f32.mrf.mxu2 }
  0xb6   :  { %v289_v13 = vadd.f32 %v288_v33, %v250_v37  ;;  %v321_v39 = vpop.f32.mrf.mxu1  ;;  %v223_v42 = vadd.f32 %v222_v38, %v188_v40 }
  0xb8   :  { %v318_v41 = vadd.f32 %v317_v34, %v289_v13 }
  0xba   :  { %324 = vst.msk [vmem:[#allocation10] sm:$0xff] %vm101_vm0, %v318_v41 }
  0xbb   :  { %v255_v43 = vpop.f32.mrf.mxu3  ;;  %v439_v45 = vpop.f32.mrf.mxu0 }
  0xbc   :  { %v256_v44 = vadd.f32 %v255_v43, %v223_v42 }
  0xbd   :  { %v356_v47 = vpop.f32.mrf.mxu2 }
  0xbe   :  { %v293_v46 = vadd.f32 %v292_v28, %v256_v44  ;;  %v471_v48 = vpop.f32.mrf.mxu1 }
  0xc0   :  { %v322_v49 = vadd.f32 %v321_v39, %v293_v46 }
  0xc2   :  { %325 = vst.msk [vmem:[#allocation10 + $0x8] sm:$0xff] %vm101_vm0, %v322_v49 }
  0xc3   :  { %v405_v50 = vpop.f32.mrf.mxu3  ;;  %786 = dma.vmem_to_hbm [thread:$0]  %s779_s25, 256, %s781_s28, [#allocation4], %s1028_s13, %s1028_s13, %s1029_s14   ;;  %v444_v51 = vpop.f32.mrf.mxu0 }
  0xc4   :  { %v406_v54 = vadd.f32 %v405_v50, %v356_v47 }
  0xc5   :  { %v364_v52 = vpop.f32.mrf.mxu2 }
  0xc6   :  { %v477_v53 = vpop.f32.mrf.mxu1  ;;  %v440_v56 = vadd.f32 %v439_v45, %v406_v54 }
  0xc8   :  { %v472_v60 = vadd.f32 %v471_v48, %v440_v56 }
  0xcb   :  { %v409_v55 = vpop.f32.mrf.mxu3  ;;  %v582_v57 = vpop.f32.mrf.mxu0 }
  0xcc   :  { %v410_v61 = vadd.f32 %v409_v55, %v364_v52  ;;  %v583_v9 = vadd.f32 %v848_v5, %v582_v57 }
  0xcd   :  { %v510_v58 = vpop.f32.mrf.mxu2 }
  0xce   :  { %v631_v59 = vpop.f32.mrf.mxu1  ;;  %v511_v62 = vadd.f32 %v510_v58, %v472_v60  ;;  %v445_v0 = vadd.f32 %v444_v51, %v410_v61 }
  0xcf   :  { %v632_v12 = vadd.f32 %v631_v59, %v583_v9 }
  0xd0   :  { %v478_v4 = vadd.f32 %v477_v53, %v445_v0 }
  0xd3   :  { %v539_v63 = vpop.f32.mrf.mxu3  ;;  %v590_v3 = vpop.f32.mrf.mxu0 }
  0xd4   :  { %v540_v1 = vadd.f32 %v539_v63, %v511_v62  ;;  %v591_v19 = vadd.f32 %v848_v5, %v590_v3 }
  0xd5   :  { %v514_v2 = vpop.f32.mrf.mxu2 }
  0xd6   :  { %546 = vst.msk [vmem:[#allocation11] sm:$0xff] %vm101_vm0, %v540_v1  ;;  %v635_v6 = vpop.f32.mrf.mxu1  ;;  %v515_v7 = vadd.f32 %v514_v2, %v478_v4 }
  0xd7   :  { %v636_v24 = vadd.f32 %v635_v6, %v591_v19 }
  0xdb   :  { %v543_v8 = vpop.f32.mrf.mxu3  ;;  %v736_v14 = vpop.f32.mrf.mxu0 }
  0xdc   :  { %v544_v10 = vadd.f32 %v543_v8, %v515_v7 }
  0xdd   :  { %v665_v11 = vpop.f32.mrf.mxu2 }
  0xde   :  { %547 = vst.msk [vmem:[#allocation11 + $0x8] sm:$0xff] %vm101_vm0, %v544_v10  ;;  %v666_v15 = vadd.f32 %v665_v11, %v632_v12  ;;  %v765_v17 = vpop.f32.mrf.mxu1 }
  0xdf   :  { %799 = dma.vmem_to_hbm [thread:$0]  %s792_s9, 256, %s794_s12, [#allocation12], %s1028_s13, %s1028_s13, %s1029_s14  }
  0xe3   :  { %v697_v16 = vpop.f32.mrf.mxu3  ;;  %v740_v29 = vpop.f32.mrf.mxu0 }
  0xe4   :  { %v698_v21 = vadd.f32 %v697_v16, %v666_v15 }
  0xe5   :  { %v670_v23 = vpop.f32.mrf.mxu2 }
  0xe6   :  { %v737_v22 = vadd.f32 %v736_v14, %v698_v21  ;;  %v671_v27 = vadd.f32 %v670_v23, %v636_v24  ;;  %v769_v32 = vpop.f32.mrf.mxu1 }
  0xe8   :  { %v766_v26 = vadd.f32 %v765_v17, %v737_v22 }
  0xea   :  { %772 = vst.msk [vmem:[#allocation13] sm:$0xff] %vm101_vm0, %v766_v26 }
  0xeb   :  { %v703_v25 = vpop.f32.mrf.mxu3 }
  0xec   :  { %v704_v30 = vadd.f32 %v703_v25, %v671_v27 }
  0xee   :  { %v741_v31 = vadd.f32 %v740_v29, %v704_v30 }
  0xf0   :  { %v770_v33 = vadd.f32 %v769_v32, %v741_v31 }
  0xf2   :  { %773 = vst.msk [vmem:[#allocation13 + $0x8] sm:$0xff] %vm101_vm0, %v770_v33 }
  0xf3   :  { %812 = dma.vmem_to_hbm [thread:$0]  %s805_s7, 256, %s807_s17, [#allocation12], %s1028_s13, %s1028_s13, %s1029_s14  }
  0xf4   :  { %1023 = dma.done.wait [#allocation4], 256  }
  0xf5   :  { %1024 = vsyncadd [#allocation4], 4294967040 }
  0xf6   :  { %1025 = dma.done.wait [#allocation12], 512  }
  0xf7   :  { %1026 = vsyncadd [#allocation12], 4294966784 }
  0xf8   :  { %825 = vsyncpa [#allocation3], 1 }
  0xf9   :  { %826 = vsyncpa [#allocation6], 1 }
  0xfa   :  { %827 = vsyncpa [#allocation9], 1 }
  0xfb   :  { %828 = vsyncpa [#allocation4], 1 }
  0xfc   :  { %829 = vsyncpa [#allocation12], 1 }

</bundles_post_ra>
